<compile_context>
chip_gen: v5e
topology: v5e:2x2
jax: 0.10.0
libtpu: 0.0.40
codegen_flags: <defaults>
</compile_context>

<pallas_src>
import math

import jax
import jax.numpy as jnp
from jax.experimental import pallas as pl
from jax.experimental.pallas import tpu as pltpu


def get_edge_feature_dims():
    # Deterministic synthetic edge-feature cardinalities (bond type / stereo / conj).
    return [4, 3, 2]


# ------------------------- Pallas kernel -------------------------------------

def edge_encoder_kernel(x_ref, w_ref, b_ref, o_ref):
    # x_ref: (TM, K) tile of edges     w_ref: (K, E) fused weight (resident)
    # b_ref: (1, E)  fused bias        o_ref: (TM, E) output tile
    acc = jnp.dot(x_ref[...], w_ref[...], preferred_element_type=jnp.float32)
    o_ref[...] = (acc + b_ref[...]).astype(o_ref.dtype)


# ------------------------- parameter preparation (done once) -----------------

def prepare_params(weights, biases):
    """Fuse the per-feature Linears into one (K, E) weight + (1, E) bias.

    weights: list of (dim_i, emb_dim); biases: list of (emb_dim,).
    Done once, outside the per-call hot path.
    """
    W = jnp.concatenate(weights, axis=0)                      # (K, E)
    b = jnp.sum(jnp.stack(biases, axis=0), axis=0)[None, :]   # (1, E)
    return W, b


# ------------------------- wrapper (PyTorch-compatible layout) ----------------

def edge_encoder(x, W, b, *, tile_m=2048):
    """x: (num_edges, sum(dims)) edge-major, exactly as in the PyTorch module.

    Returns (num_edges, emb_dim).  Ragged edge counts are handled by the grid
    itself (partial final block), so there is no wrapper-side padding or
    slicing of either the input or the output.
    """
    N, K = x.shape
    Kw, E = W.shape
    assert K == Kw, (K, Kw)

    # Edge tile: multiple of 8 sublanes, clamped to (rounded-up) N.
    tile = max(8, min(tile_m, N))
    tile = ((tile + 7) // 8) * 8
    grid = (pl.cdiv(N, tile),)

    flops = 2 * N * K * E
    bytes_accessed = 4 * (N * K + K * E + E + N * E)

    return pl.pallas_call(
        edge_encoder_kernel,
        out_shape=jax.ShapeDtypeStruct((N, E), x.dtype),
        grid_spec=pl.GridSpec(
            grid=grid,
            in_specs=[
                pl.BlockSpec((tile, K), lambda i: (i, 0)),  # edge tile
                pl.BlockSpec((K, E), lambda i: (0, 0)),     # fused weight (resident)
                pl.BlockSpec((1, E), lambda i: (0, 0)),     # fused bias   (resident)
            ],
            out_specs=pl.BlockSpec((tile, E), lambda i: (i, 0)),
        ),
        compiler_params=pltpu.CompilerParams(
            dimension_semantics=("parallel",),
            vmem_limit_bytes=32 * 1024 * 1024,
        ),
        cost_estimate=pl.CostEstimate(
            flops=flops, transcendentals=0, bytes_accessed=bytes_accessed),
    )(x, W, b)


# ------------------------- parameter init (deterministic) --------------------

def init_params(key, emb_dim):
    dims = get_edge_feature_dims()
    weights, biases = [], []
    for d in dims:
        kw, kb, key = jax.random.split(key, 3)
        # torch.nn.init.xavier_uniform_ on (emb_dim, d) -> bound sqrt(6/(d+emb_dim))
        bound_w = math.sqrt(6.0 / (d + emb_dim))
        # store as (d, emb_dim) so forward is x @ W (transpose of torch layout)
        weights.append(jax.random.uniform(kw, (d, emb_dim), jnp.float32,
                                          minval=-bound_w, maxval=bound_w))
        # torch Linear default bias init: U(-1/sqrt(fan_in), 1/sqrt(fan_in))
        bound_b = 1.0 / math.sqrt(d)
        biases.append(jax.random.uniform(kb, (emb_dim,), jnp.float32,
                                         minval=-bound_b, maxval=bound_b))
    return weights, biases


def edge_encoder_ref(x, weights, biases):
    """Pure-JAX reference mirroring the PyTorch loop exactly."""
    dims = get_edge_feature_dims()
    off = 0
    out = 0
    for d, W, b in zip(dims, weights, biases):
        out = out + x[:, off:off + d] @ W + b
        off += d
    return out


# ------------------------- main ----------------------------------------------

if __name__ == "__main__":
    key = jax.random.PRNGKey(0)
    emb_dim = 32
    num_edges = 250                            # deliberately ragged (not 8/128-aligned)
    total_dim = sum(get_edge_feature_dims())   # 9

    kx, kp = jax.random.split(key)
    x = jax.random.normal(kx, (num_edges, total_dim), dtype=jnp.float32)
    weights, biases = init_params(kp, emb_dim)

    # Fuse parameters once (hoisted out of the forward hot path).
    W, b = prepare_params(weights, biases)
    W = jax.block_until_ready(W)
    b = jax.block_until_ready(b)

    fwd = jax.jit(edge_encoder, static_argnames=("tile_m",))
    ref = edge_encoder_ref(x, weights, biases)

    # Small tile -> grid of 2 with a partial final block (exercises tiling).
    out_small = jax.block_until_ready(fwd(x, W, b, tile_m=128))
    assert out_small.shape == (num_edges, emb_dim)
    assert jnp.allclose(out_small, ref, atol=1e-4, rtol=1e-4), "mismatch (tile_m=128)"

    # Default large tile (clamped to the edge count) -> grid of 1.
    out_big = jax.block_until_ready(fwd(x, W, b))
    assert jnp.allclose(out_big, ref, atol=1e-4, rtol=1e-4), "mismatch (default tile)"

    print("KERNEL_OK")
</pallas_src>

<mosaic_0001>
module attributes {stable_mosaic.version = 11 : i64} {
  func.func @edge_encoder_kernel(%arg0: i32, %arg1: memref<128x9xf32, #tpu.memory_space<vmem>>, %arg2: memref<9x32xf32, #tpu.memory_space<vmem>>, %arg3: memref<1x32xf32, #tpu.memory_space<vmem>>, %arg4: memref<128x32xf32, #tpu.memory_space<vmem>>) attributes {dimension_semantics = [#tpu.dimension_semantics<parallel>], iteration_bounds = array<i64: 2>, scalar_prefetch = 0 : i64, scratch_operands = 0 : i64, tpu.core_type = #tpu.core_type<tc>, window_params = [{transform_indices = @transform_0, window_bounds = array<i64: 128, 9>}, {pipeline_mode = #tpu.pipeline_mode<synchronous>, transform_indices = @transform_1, window_bounds = array<i64: 9, 32>}, {pipeline_mode = #tpu.pipeline_mode<synchronous>, transform_indices = @transform_2, window_bounds = array<i64: 1, 32>}, {transform_indices = @transform_3, window_bounds = array<i64: 128, 32>}]} {
    %c0 = arith.constant 0 : index
    %c0_0 = arith.constant 0 : index
    %0 = vector.load %arg1[%c0, %c0_0] : memref<128x9xf32, #tpu.memory_space<vmem>>, vector<128x9xf32>
    %c0_1 = arith.constant 0 : index
    %c0_2 = arith.constant 0 : index
    %1 = vector.load %arg2[%c0_1, %c0_2] : memref<9x32xf32, #tpu.memory_space<vmem>>, vector<9x32xf32>
    %cst = arith.constant dense<0.000000e+00> : vector<128x32xf32>
    %2 = tpu.matmul %0, %1, %cst {dimension_numbers = #tpu.dot_dimension_numbers<[1], [0], [0], [1], [0, 0, 1, 1], [], []>} : vector<128x9xf32>, vector<9x32xf32>, vector<128x32xf32> -> vector<128x32xf32>
    %c0_3 = arith.constant 0 : index
    %c0_4 = arith.constant 0 : index
    %3 = vector.load %arg3[%c0_3, %c0_4] : memref<1x32xf32, #tpu.memory_space<vmem>>, vector<1x32xf32>
    %4 = vector.broadcast %3 : vector<1x32xf32> to vector<128x32xf32>
    %5 = arith.addf %2, %4 : vector<128x32xf32>
    %c0_5 = arith.constant 0 : index
    %c0_6 = arith.constant 0 : index
    %6 = vector.load %arg4[%c0_5, %c0_6] : memref<128x32xf32, #tpu.memory_space<vmem>>, vector<128x32xf32>
    tpu.vector_store %arg4[%c0_5, %c0_6], %5 {strides = array<i32>} : memref<128x32xf32, #tpu.memory_space<vmem>>, vector<128x32xf32>,
    return
  }
  func.func @transform_0(%arg0: i32) -> (i32, i32) {
    %c0_i32 = arith.constant 0 : i32
    %c0_i32_0 = arith.constant 0 : i32
    return %arg0, %c0_i32 : i32, i32
  }
  func.func @transform_1(%arg0: i32) -> (i32, i32) {
    %c0_i32 = arith.constant 0 : i32
    %c0_i32_0 = arith.constant 0 : i32
    %c0_i32_1 = arith.constant 0 : i32
    return %c0_i32, %c0_i32_0 : i32, i32
  }
  func.func @transform_2(%arg0: i32) -> (i32, i32) {
    %c0_i32 = arith.constant 0 : i32
    %c0_i32_0 = arith.constant 0 : i32
    %c0_i32_1 = arith.constant 0 : i32
    return %c0_i32, %c0_i32_0 : i32, i32
  }
  func.func @transform_3(%arg0: i32) -> (i32, i32) {
    %c0_i32 = arith.constant 0 : i32
    %c0_i32_0 = arith.constant 0 : i32
    return %arg0, %c0_i32 : i32, i32
  }
}

</mosaic_0001>

<bundles_post_ra>
// kernel: edge_encoder.1
= control target key start
LH: loop header
LB: loop body
LE: loop exit
PB: predicated region body
PF: predicated region fallthrough
CT: control target
= control target key end

     0   :  { %s458_s12 = smov 0   ;;  %s541_s0 = inlined_call_operand.vmem [shape: f32[250,9], index: 0, kind: input, shape index: {}]   ;;  %s542_s1 = inlined_call_operand.vmem [shape: f32[9,32], index: 1, kind: input, shape index: {}]   ;;  %s543_s2 = inlined_call_operand.vmem [shape: f32[1,32], index: 2, kind: input, shape index: {}]   ;;  %s544_s3 = inlined_call_operand.vmem [shape: f32[250,32], index: 3, kind: output, shape index: {}]  }
   0x1 LB: > { %s387_s13 = sadd.s32 4294967295, %s436_s12   ;;  %p391_p0 = scmp.ge.s32.totalorder %s436_s12, 1  ;;  %s436_s12 = sphi %s458_s12, %s13_s12  }
   0x2   : > { %p138_p1 = scmp.lt.s32.totalorder %s436_s12, 3 }
   0x4   : > { %p139_p2 = pnand %p391_p0, %p138_p1 }
   0x5   : > { %s392_s18 = sshll.u32 (!%p139_p2), %s387_s13, 4 }
   0x6   : > { %142 = sbr.rel (%p139_p2) target bundleno = 176 (0xb0), region = 32  ;;  %p163_p3 = scmp.lt.s32.totalorder (!%p139_p2), %s392_s18, 31 }
   0xb   : > { %v191_v0 = vld [vmem:[%s542_s1 + $0x8] sm:$0x1]  ;;  %vm245_vm0 = vcmask 1040384   ;;  %v190_v1 = vld [vmem:[%s542_s1] sm:$0xff]  ;;  %s546_s18 = smov (!%p163_p3, %s392_s18), 31  ;;  %vm196_vm1 = vcmask 72704  }
   0xc   : > { %416 = vmatpush.msk.msra.mxu2 %vm245_vm0, %v191_v0  ;;  %417 = vmatpush.msk.msra.mxu3 %vm245_vm0, %v191_v0  ;;  %s393_s19 = sshll.u32 %s546_s18, 3  ;;  %v429_v18 = vld [vmem:[%s543_s2] ss:$0 sm:$0xff]  ;;  %vm314_vm2 = vcmask 261120  }
   0xd   : > { %396 = vmatpush.msk.msra.mxu0 %vm245_vm0, %v191_v0  ;;  %415 = vmatpush.msk.msra.mxu1 %vm245_vm0, %v191_v0  ;;  %s166_s22 = scalar_lea.vmem %s541_s0, %s393_s19  ;;  %s504_s27 = scalar_lea.vmem %s544_s3, %s393_s19 }
   0xe   : > { %419 = vmatpush.msra.mxu2 %v190_v1  ;;  %420 = vmatpush.msra.mxu3 %v190_v1  ;;  %v182_v2 = vld [vmem:[%s166_s22 + $0x40] sm:$0xff]  ;;  %v183_v6 = vld [vmem:[%s166_s22 + $0x48] sm:$0xff]  ;;  %v184_v10 = vld [vmem:[%s166_s22 + $0x50] sm:$0xff] }
   0xf   : > { %264 = vmatpush.msra.mxu0 %v190_v1  ;;  %418 = vmatpush.msra.mxu1 %v190_v1  ;;  %v186_v3 = vld [vmem:[%s166_s22 + $0x60] sm:$0xff]  ;;  %v187_v7 = vld [vmem:[%s166_s22 + $0x68] sm:$0xff]  ;;  %v188_v11 = vld [vmem:[%s166_s22 + $0x70] sm:$0xff] }
  0x10   : > { %v174_v4 = vld [vmem:[%s166_s22] sm:$0xff]  ;;  %405 = vmatmul.msk.f32.vlgmr.msra.gmra.mxu2 %vm196_vm1, %v182_v2  ;;  %409 = vmatmul.msk.f32.vlgmr.msra.gmra.mxu3 %vm196_vm1, %v186_v3  ;;  %v175_v8 = vld [vmem:[%s166_s22 + $0x8] sm:$0xff]  ;;  %v176_v12 = vld [vmem:[%s166_s22 + $0x10] sm:$0xff] }
  0x11   : > { %v178_v5 = vld [vmem:[%s166_s22 + $0x20] sm:$0xff]  ;;  %397 = vmatmul.msk.f32.vlgmr.msra.gmra.mxu0 %vm196_vm1, %v174_v4  ;;  %v179_v9 = vld [vmem:[%s166_s22 + $0x28] sm:$0xff]  ;;  %v180_v13 = vld [vmem:[%s166_s22 + $0x30] sm:$0xff] }
  0x12   : > { %401 = vmatmul.msk.f32.vlgmr.msra.gmra.mxu1 %vm196_vm1, %v178_v5  ;;  %v185_v14 = vld [vmem:[%s166_s22 + $0x58] sm:$0xff] }
  0x13   : > { %v189_v15 = vld [vmem:[%s166_s22 + $0x78] sm:$0xff] }
  0x14   : > { %v177_v16 = vld [vmem:[%s166_s22 + $0x18] sm:$0xff] }
  0x15   : > { %v181_v17 = vld [vmem:[%s166_s22 + $0x38] sm:$0xff] }
  0x18   : > { %406 = vmatmul.msk.f32.gmra.mxu2 %vm196_vm1, %v183_v6  ;;  %410 = vmatmul.msk.f32.gmra.mxu3 %vm196_vm1, %v187_v7 }
  0x19   : > { %398 = vmatmul.msk.f32.gmra.mxu0 %vm196_vm1, %v175_v8 }
  0x1a   : > { %402 = vmatmul.msk.f32.gmra.mxu1 %vm196_vm1, %v179_v9 }
  0x20   : > { %407 = vmatmul.msk.f32.gmra.mxu2 %vm196_vm1, %v184_v10  ;;  %411 = vmatmul.msk.f32.gmra.mxu3 %vm196_vm1, %v188_v11 }
  0x21   : > { %399 = vmatmul.msk.f32.gmra.mxu0 %vm196_vm1, %v176_v12 }
  0x22   : > { %403 = vmatmul.msk.f32.gmra.mxu1 %vm196_vm1, %v180_v13 }
  0x28   : > { %408 = vmatmul.msk.f32.gmra.mxu2 %vm196_vm1, %v185_v14  ;;  %412 = vmatmul.msk.f32.gmra.mxu3 %vm196_vm1, %v189_v15 }
  0x29   : > { %400 = vmatmul.msk.f32.gmra.mxu0 %vm196_vm1, %v177_v16 }
  0x2a   : > { %404 = vmatmul.msk.f32.gmra.mxu1 %vm196_vm1, %v181_v17 }
  0x8e   : > { %v266_v19 = vpop.f32.mrf.mxu0 }
  0x8f   : > { %v278_v20 = vpop.f32.mrf.mxu1  ;;  %v267_v21 = vadd.f32 %v429_v18, %v266_v19 }
  0x90   : > { %v279_v22 = vadd.f32 %v429_v18, %v278_v20 }
  0x91   : > { %315 = vst.msk [vmem:[%s504_s27] sm:$0xff] %vm314_vm2, %v267_v21 }
  0x92   : > { %319 = vst.msk [vmem:[%s504_s27 + $0x20] sm:$0xff] %vm314_vm2, %v279_v22 }
  0x93   : > { %v290_v23 = vpop.f32.mrf.mxu2  ;;  %v302_v24 = vpop.f32.mrf.mxu3 }
  0x94   : > { %v291_v25 = vadd.f32 %v429_v18, %v290_v23  ;;  %v303_v26 = vadd.f32 %v429_v18, %v302_v24 }
  0x96   : > { %323 = vst.msk [vmem:[%s504_s27 + $0x40] sm:$0xff] %vm314_vm2, %v291_v25  ;;  %v269_v27 = vpop.f32.mrf.mxu0 }
  0x97   : > { %v281_v28 = vpop.f32.mrf.mxu1  ;;  %327 = vst.msk [vmem:[%s504_s27 + $0x60] sm:$0xff] %vm314_vm2, %v303_v26  ;;  %v270_v29 = vadd.f32 %v429_v18, %v269_v27 }
  0x98   : > { %v282_v30 = vadd.f32 %v429_v18, %v281_v28 }
  0x99   : > { %316 = vst.msk [vmem:[%s504_s27 + $0x8] sm:$0xff] %vm314_vm2, %v270_v29 }
  0x9a   : > { %320 = vst.msk [vmem:[%s504_s27 + $0x28] sm:$0xff] %vm314_vm2, %v282_v30 }
  0x9b   : > { %v293_v31 = vpop.f32.mrf.mxu2  ;;  %v305_v32 = vpop.f32.mrf.mxu3 }
  0x9c   : > { %v294_v33 = vadd.f32 %v429_v18, %v293_v31  ;;  %v306_v34 = vadd.f32 %v429_v18, %v305_v32 }
  0x9e   : > { %324 = vst.msk [vmem:[%s504_s27 + $0x48] sm:$0xff] %vm314_vm2, %v294_v33  ;;  %v272_v35 = vpop.f32.mrf.mxu0 }
  0x9f   : > { %v284_v36 = vpop.f32.mrf.mxu1  ;;  %328 = vst.msk [vmem:[%s504_s27 + $0x68] sm:$0xff] %vm314_vm2, %v306_v34  ;;  %v273_v37 = vadd.f32 %v429_v18, %v272_v35 }
  0xa0   : > { %v285_v38 = vadd.f32 %v429_v18, %v284_v36 }
  0xa1   : > { %317 = vst.msk [vmem:[%s504_s27 + $0x10] sm:$0xff] %vm314_vm2, %v273_v37 }
  0xa2   : > { %321 = vst.msk [vmem:[%s504_s27 + $0x30] sm:$0xff] %vm314_vm2, %v285_v38 }
  0xa3   : > { %v296_v39 = vpop.f32.mrf.mxu2  ;;  %v308_v40 = vpop.f32.mrf.mxu3 }
  0xa4   : > { %v297_v41 = vadd.f32 %v429_v18, %v296_v39  ;;  %v309_v42 = vadd.f32 %v429_v18, %v308_v40 }
  0xa6   : > { %325 = vst.msk [vmem:[%s504_s27 + $0x50] sm:$0xff] %vm314_vm2, %v297_v41  ;;  %v275_v43 = vpop.f32.mrf.mxu0 }
  0xa7   : > { %v287_v44 = vpop.f32.mrf.mxu1  ;;  %329 = vst.msk [vmem:[%s504_s27 + $0x70] sm:$0xff] %vm314_vm2, %v309_v42  ;;  %v276_v45 = vadd.f32 %v429_v18, %v275_v43 }
  0xa8   : > { %v288_v46 = vadd.f32 %v429_v18, %v287_v44 }
  0xa9   : > { %318 = vst.msk [vmem:[%s504_s27 + $0x18] sm:$0xff] %vm314_vm2, %v276_v45 }
  0xaa   : > { %322 = vst.msk [vmem:[%s504_s27 + $0x38] sm:$0xff] %vm314_vm2, %v288_v46 }
  0xab   : > { %v299_v47 = vpop.f32.mrf.mxu2  ;;  %v311_v48 = vpop.f32.mrf.mxu3 }
  0xac   : > { %v300_v49 = vadd.f32 %v429_v18, %v299_v47  ;;  %v312_v50 = vadd.f32 %v429_v18, %v311_v48 }
  0xae   : > { %326 = vst.msk [vmem:[%s504_s27 + $0x58] sm:$0xff] %vm314_vm2, %v300_v49 }
  0xaf   : > { %330 = vst.msk [vmem:[%s504_s27 + $0x78] sm:$0xff] %vm314_vm2, %v312_v50 }
  0xb0 PF: > { %s13_s12 = sadd.s32 1, %s436_s12  }
  0xb1   : > { %p10_p4 = scmp.ge.s32.totalorder %s13_s12, 4  }
  0xb3   :  { %12 = sbr.rel (!%p10_p4) target bundleno = 1 (0x1), region = 62 }

</bundles_post_ra>
